<compile_context>
chip_gen: v7x
topology: tpu7x:2x2x1
jax: 0.10.0
libtpu: 0.0.40
codegen_flags: <defaults>
</compile_context>

<pallas_src>
import random
import functools
import numpy as np
import jax
import jax.numpy as jnp
from jax.experimental import pallas as pl
from jax.experimental.pallas import tpu as pltpu


def _round_up(x, m):
    return (x + m - 1) // m * m


def _pick_tiles(n, U):
    """Tile sizes shared by the host-side mask padding and the jitted wrapper.

    U (reduction) tiles up to 2048 amortize the ~0.35 us per-grid-step overhead
    and keep the mask stream near HBM roofline; n tiles up to 256 fill the MXU
    M dimension on v6e/v7x, balance the mask stream against embed re-reads
    (embed is re-fetched once per n-tile), and keep >=2 "parallel" n-tiles for
    v7x's two TensorCores once the batch exceeds 256 destination rows.
    int8 mask tiling needs the sublane dim to be a multiple of 32.
    """
    n32 = _round_up(n, 32)
    nn = max(1, -(-n32 // 256))
    n_tile = _round_up(-(-n32 // nn), 32)
    n_p = _round_up(n, n_tile)

    u128 = _round_up(U, 128)
    nu = max(1, -(-u128 // 2048))
    u_tile = _round_up(-(-u128 // nu), 128)
    U_p = _round_up(U, u_tile)
    return n_tile, u_tile, n_p, U_p


# ----------------------------- Pallas kernel --------------------------------
def sage_layer_kernel(mask_ref, embed_ref, self_ref, wself_ref, wagg_ref,
                      out_ref, acc_ref):
    """Grid = (n_tiles, u_tiles); axis 1 (unique neighbors U) is the reduction.

    mask_ref : (nt, ut)   int8 0/1 neighbor indicator tile
    embed_ref: (ut, Dp1)  bf16; lane 0 is an all-ones column, lanes 1:1+D feats
    self_ref : (nt, Dp)   bf16 self features (lanes :D real, rest zero)
    wself_ref: (Dp, Op)   bf16, rows :D = W[:, :D].T          (self half of W)
    wagg_ref : (Dp1, Op)  bf16, row 0 zero, rows 1:1+D = W[:, D:2D].T (agg half)
    out_ref  : (nt, Op)   relu([self, mean_agg] @ W.T)  (bf16 or f32)
    acc_ref  : (nt, Dp1)  f32 running [count | neighbor-feature-sum]
    """
    uj = pl.program_id(1)

    @pl.when(uj == 0)
    def _init():
        acc_ref[...] = jnp.zeros_like(acc_ref)

    # One MXU pass per U tile accumulates both the per-row neighbor count
    # (lane 0, via the ones-column prepended to embed) and the feature sum.
    acc_ref[...] += jnp.dot(mask_ref[...].astype(jnp.bfloat16), embed_ref[...],
                            preferred_element_type=jnp.float32)

    @pl.when(uj == pl.num_programs(1) - 1)
    def _finalize():
        acc = acc_ref[...]
        # MEAN aggregator: exact reciprocal (once per n-tile, counts are tiny);
        # zero-degree rows guarded with max(count, 1).
        inv = 1.0 / jnp.maximum(acc[:, 0:1], 1.0)
        agg = (acc * inv).astype(jnp.bfloat16)   # lane 0 hits a zero weight row
        out = jnp.dot(self_ref[...], wself_ref[...],
                      preferred_element_type=jnp.float32)
        out = out + jnp.dot(agg, wagg_ref[...],
                            preferred_element_type=jnp.float32)
        out_ref[...] = jnp.maximum(out, 0.0).astype(out_ref.dtype)   # ReLU


@functools.partial(jax.jit, static_argnames=("out_size", "out_f32"))
def sage_layer_pallas(mask_i8, embed, self_feats, w_self, w_agg, *,
                      out_size, out_f32):
    """One GraphSage layer: mean-aggregate + concat-linear + ReLU on TPU.

    mask_i8   : (n_p, U_p) int8 0/1, already padded on host
    embed     : (U, D)     neighbor features (f32 or bf16)
    self_feats: (n, D)     self features (f32 or bf16)
    w_self    : (Dp, O_p)  bf16 padded W[:, :D].T
    w_agg     : (Dp1, O_p) bf16 padded (ones-column-shifted) W[:, D:2D].T
    returns   : (n, out_size)  bf16 (intermediate) or f32 (final layer)
    """
    n_p, U_p = mask_i8.shape
    n, D = self_feats.shape
    U = embed.shape[0]
    Dp, O_p = w_self.shape
    Dp1 = w_agg.shape[0]

    n_tile, u_tile, n_p2, U_p2 = _pick_tiles(n, U)
    assert (n_p, U_p) == (n_p2, U_p2), "host/JIT tiling mismatch"

    bf = jnp.bfloat16
    self_p = jnp.pad(self_feats.astype(bf), ((0, n_p - n), (0, Dp - D)))
    embed_p = jnp.pad(
        jnp.concatenate([jnp.ones((U, 1), bf), embed.astype(bf)], axis=1),
        ((0, U_p - U), (0, Dp1 - 1 - D)))

    out_dtype = jnp.float32 if out_f32 else jnp.bfloat16
    grid = (n_p // n_tile, U_p // u_tile)

    out_p = pl.pallas_call(
        sage_layer_kernel,
        out_shape=jax.ShapeDtypeStruct((n_p, O_p), out_dtype),
        grid=grid,
        in_specs=[
            pl.BlockSpec((n_tile, u_tile), lambda i, j: (i, j)),   # int8 mask
            pl.BlockSpec((u_tile, Dp1), lambda i, j: (j, 0)),      # embed+ones
            pl.BlockSpec((n_tile, Dp), lambda i, j: (i, 0)),       # self feats
            pl.BlockSpec((Dp, O_p), lambda i, j: (0, 0)),          # W_self^T
            pl.BlockSpec((Dp1, O_p), lambda i, j: (0, 0)),         # W_agg^T
        ],
        out_specs=pl.BlockSpec((n_tile, O_p), lambda i, j: (i, 0)),
        scratch_shapes=[pltpu.VMEM((n_tile, Dp1), jnp.float32)],   # [cnt|sum]
        compiler_params=pltpu.CompilerParams(
            dimension_semantics=("parallel", "arbitrary")),
    )(mask_i8, embed_p, self_p, w_self, w_agg)

    return out_p[:n, :out_size]


# ----------------------------- GraphSage (host glue) ------------------------
class GraphSageJax:
    def __init__(self, num_layers, input_size, out_size, raw_features, adj_lists,
                 gcn=False, agg_func='MEAN', seed=0):
        # TODO(synk): only agg_func='MEAN' and gcn=False implemented (the
        # reference aggregate() likewise only defines the MEAN branch).
        assert agg_func == 'MEAN'
        self.num_layers = num_layers
        self.input_size = input_size
        self.out_size = out_size
        self.gcn = gcn
        self.agg_func = agg_func
        self.raw_features = raw_features          # jnp (num_nodes, input_size)
        self.adj_lists = adj_lists                # dict: node -> set of neighbors

        # One W of shape (out_size, 2*layer_in) per layer (mirrors SageLayer).
        # Split into self/agg halves, transpose, pad lane-dense and device-place
        # once; the agg half is shifted one row down to absorb the ones-column
        # (count lane) of the aggregated features.
        key = jax.random.PRNGKey(seed)
        self.w_ref = []     # f32 numpy, reference path
        self.w_self = []    # bf16 device, (Dp, O_p)
        self.w_agg = []     # bf16 device, (Dp1, O_p)
        O_p = _round_up(out_size, 128)
        for index in range(1, num_layers + 1):
            layer_in = out_size if index != 1 else input_size
            key, sub = jax.random.split(key)
            w = jax.random.normal(sub, (out_size, 2 * layer_in), jnp.float32) * 0.1
            w_np = np.asarray(w)
            self.w_ref.append(w_np)
            Dp = _round_up(layer_in, 128)
            Dp1 = _round_up(layer_in + 1, 128)
            ws = np.zeros((Dp, O_p), np.float32)
            ws[:layer_in, :out_size] = w_np[:, :layer_in].T
            wa = np.zeros((Dp1, O_p), np.float32)
            wa[1:1 + layer_in, :out_size] = w_np[:, layer_in:].T
            self.w_self.append(jnp.asarray(ws, dtype=jnp.bfloat16))
            self.w_agg.append(jnp.asarray(wa, dtype=jnp.bfloat16))

    def _get_unique_neighs_list(self, nodes, num_sample=10):
        to_neighs = [self.adj_lists[int(node)] for node in nodes]
        if num_sample is not None:
            samp_neighs = [set(random.sample(sorted(tn), num_sample))
                           if len(tn) >= num_sample else set(tn)
                           for tn in to_neighs]
        else:
            samp_neighs = [set(tn) for tn in to_neighs]
        samp_neighs = [sn | {nodes[i]} for i, sn in enumerate(samp_neighs)]
        unique_node_list = list(set.union(*samp_neighs))
        unique_nodes_dict = {node: i for i, node in enumerate(unique_node_list)}
        return unique_node_list, samp_neighs, unique_nodes_dict

    def _node_map(self, nodes, neighs):
        _, samp_neighs, layer_nodes_dict = neighs
        assert len(samp_neighs) == len(nodes)
        return [layer_nodes_dict[x] for x in nodes]

    def _build_mask(self, nodes, pre_neighs, n_p, U_p):
        """Build the 0/1 neighbor mask already padded to (n_p, U_p) in int8."""
        unique_node_list, samp_neighs, unique_dict = pre_neighs
        assert len(nodes) == len(samp_neighs)
        if not self.gcn:
            samp_neighs = [samp_neighs[i] - {nodes[i]} for i in range(len(samp_neighs))]
        mask = np.zeros((n_p, U_p), np.int8)
        for i, sn in enumerate(samp_neighs):
            cols = [unique_dict[node] for node in sn]
            mask[i, cols] = 1
        return mask

    def forward(self, nodes_batch):
        lower_layer_nodes = list(nodes_batch)
        nodes_batch_layers = [(lower_layer_nodes,)]
        for _ in range(self.num_layers):
            lower_layer_nodes, samp, d = self._get_unique_neighs_list(lower_layer_nodes)
            nodes_batch_layers.insert(0, (lower_layer_nodes, samp, d))
        assert len(nodes_batch_layers) == self.num_layers + 1

        pre_hidden = self.raw_features
        pre_hidden_ref = np.asarray(self.raw_features, np.float32)   # numpy ref
        for index in range(1, self.num_layers + 1):
            nb = nodes_batch_layers[index][0]
            pre_neighs = nodes_batch_layers[index - 1]
            unique_node_list = pre_neighs[0]
            n, U = len(nb), len(unique_node_list)
            _, _, n_p, U_p = _pick_tiles(n, U)

            mask_i8 = self._build_mask(nb, pre_neighs, n_p, U_p)

            if pre_hidden.shape[0] == U:
                embed_matrix = pre_hidden
                embed_ref = pre_hidden_ref
            else:
                idx = np.asarray(unique_node_list, np.int32)
                embed_matrix = pre_hidden[idx]
                embed_ref = pre_hidden_ref[idx]

            if index > 1:
                nb_idx = np.asarray(self._node_map(nb, pre_neighs), np.int32)
            else:
                nb_idx = np.asarray(nb, np.int32)
            self_feats = pre_hidden[nb_idx]
            self_feats_ref = pre_hidden_ref[nb_idx]

            # --- Pallas hot path (jitted: pad feats + kernel + slice) ---
            is_last = (index == self.num_layers)
            pre_hidden = sage_layer_pallas(
                jnp.asarray(mask_i8), embed_matrix, self_feats,
                self.w_self[index - 1], self.w_agg[index - 1],
                out_size=self.out_size, out_f32=is_last)

            # --- numpy reference (mirrors torch semantics, f32) ---
            W_np = self.w_ref[index - 1]
            mask_f = mask_i8[:n, :U].astype(np.float32)
            num_neigh = mask_f.sum(1, keepdims=True)      # > 0 for this graph
            agg_ref = (mask_f / num_neigh) @ embed_ref
            combined = np.concatenate([self_feats_ref, agg_ref], axis=1)
            pre_hidden_ref = np.maximum(combined @ W_np.T, 0.0)

        return pre_hidden, pre_hidden_ref


# ----------------------------- main ------------------------------------------
if __name__ == "__main__":
    random.seed(0)
    np.random.seed(0)

    NUM_NODES = 500
    INPUT_SIZE = 64
    OUT_SIZE = 64
    NUM_LAYERS = 2

    # Deterministic synthetic graph: each node has 6 neighbors (< num_sample=10,
    # so the random.sample branch is never taken).  Offsets are spread out so
    # the per-layer unique-neighbor sets cover most of the graph.
    adj_lists = {i: {(i + 1) % NUM_NODES, (i + 2) % NUM_NODES, (i + 5) % NUM_NODES,
                     (i + 29) % NUM_NODES, (i + 97) % NUM_NODES, (i + 181) % NUM_NODES}
                 for i in range(NUM_NODES)}

    key = jax.random.PRNGKey(0)
    raw_features = jax.random.normal(key, (NUM_NODES, INPUT_SIZE), jnp.float32)

    model = GraphSageJax(NUM_LAYERS, INPUT_SIZE, OUT_SIZE, raw_features, adj_lists,
                         gcn=False, agg_func='MEAN', seed=0)

    nodes_batch = list(range(192))
    out, out_ref = model.forward(nodes_batch)
    out = jax.block_until_ready(out)

    assert out.shape == (len(nodes_batch), OUT_SIZE), out.shape
    # bf16 matmul operands + bf16 intermediate layer output -> loose tolerance.
    np.testing.assert_allclose(np.asarray(out, np.float32), out_ref,
                               rtol=5e-2, atol=5e-2)

    print("KERNEL_OK")
</pallas_src>

<mosaic_0001>
module attributes {stable_mosaic.version = 11 : i64} {
  func.func @sage_layer_kernel(%arg0: i32, %arg1: i32, %arg2: memref<192x512xi8, #tpu.memory_space<vmem>>, %arg3: memref<512x128xbf16, #tpu.memory_space<vmem>>, %arg4: memref<192x128xbf16, #tpu.memory_space<vmem>>, %arg5: memref<128x128xbf16, #tpu.memory_space<vmem>>, %arg6: memref<128x128xbf16, #tpu.memory_space<vmem>>, %arg7: memref<192x128xbf16, #tpu.memory_space<vmem>>, %arg8: memref<192x128xf32, #tpu.memory_space<vmem>>) attributes {dimension_semantics = [#tpu.dimension_semantics<parallel>, #tpu.dimension_semantics<arbitrary>], iteration_bounds = array<i64: 2, 1>, scalar_prefetch = 0 : i64, scratch_operands = 1 : i64, tpu.core_type = #tpu.core_type<tc>, window_params = [{transform_indices = @transform_0, window_bounds = array<i64: 192, 512>}, {transform_indices = @transform_1, window_bounds = array<i64: 512, 128>}, {transform_indices = @transform_2, window_bounds = array<i64: 192, 128>}, {pipeline_mode = #tpu.pipeline_mode<synchronous>, transform_indices = @transform_3, window_bounds = array<i64: 128, 128>}, {pipeline_mode = #tpu.pipeline_mode<synchronous>, transform_indices = @transform_4, window_bounds = array<i64: 128, 128>}, {transform_indices = @transform_5, window_bounds = array<i64: 192, 128>}]} {
    %c0_i32 = arith.constant 0 : i32
    %0 = arith.cmpi eq, %arg1, %c0_i32 : i32
    %1 = arith.extui %0 : i1 to i32
    %c0_i32_0 = arith.constant 0 : i32
    %2 = arith.cmpi ne, %1, %c0_i32_0 : i32
    scf.if %2 {
      %cst_10 = arith.constant 0.000000e+00 : f32
      %13 = vector.broadcast %cst_10 : f32 to vector<192x128xf32>
      %c0_11 = arith.constant 0 : index
      %c0_12 = arith.constant 0 : index
      %14 = vector.load %arg8[%c0_11, %c0_12] : memref<192x128xf32, #tpu.memory_space<vmem>>, vector<192x128xf32>
      tpu.vector_store %arg8[%c0_11, %c0_12], %13 {strides = array<i32>} : memref<192x128xf32, #tpu.memory_space<vmem>>, vector<192x128xf32>,
    } else {
    }
    %c0 = arith.constant 0 : index
    %c0_1 = arith.constant 0 : index
    %3 = vector.load %arg8[%c0, %c0_1] : memref<192x128xf32, #tpu.memory_space<vmem>>, vector<192x128xf32>
    %c0_2 = arith.constant 0 : index
    %c0_3 = arith.constant 0 : index
    %4 = vector.load %arg2[%c0_2, %c0_3] : memref<192x512xi8, #tpu.memory_space<vmem>>, vector<192x512xi8>
    %5 = arith.sitofp %4 : vector<192x512xi8> to vector<192x512xbf16>
    %c0_4 = arith.constant 0 : index
    %c0_5 = arith.constant 0 : index
    %6 = vector.load %arg3[%c0_4, %c0_5] : memref<512x128xbf16, #tpu.memory_space<vmem>>, vector<512x128xbf16>
    %cst = arith.constant dense<0.000000e+00> : vector<192x128xf32>
    %7 = tpu.matmul %5, %6, %cst {dimension_numbers = #tpu.dot_dimension_numbers<[1], [0], [0], [1], [0, 0, 1, 1], [], []>} : vector<192x512xbf16>, vector<512x128xbf16>, vector<192x128xf32> -> vector<192x128xf32>
    %8 = arith.addf %3, %7 : vector<192x128xf32>
    %c0_6 = arith.constant 0 : index
    %c0_7 = arith.constant 0 : index
    %9 = vector.load %arg8[%c0_6, %c0_7] : memref<192x128xf32, #tpu.memory_space<vmem>>, vector<192x128xf32>
    tpu.vector_store %arg8[%c0_6, %c0_7], %8 {strides = array<i32>} : memref<192x128xf32, #tpu.memory_space<vmem>>, vector<192x128xf32>,
    %c0_i32_8 = arith.constant 0 : i32
    %10 = arith.cmpi eq, %arg1, %c0_i32_8 : i32
    %11 = arith.extui %10 : i1 to i32
    %c0_i32_9 = arith.constant 0 : i32
    %12 = arith.cmpi ne, %11, %c0_i32_9 : i32
    scf.if %12 {
      %c0_10 = arith.constant 0 : index
      %c0_11 = arith.constant 0 : index
      %13 = vector.load %arg8[%c0_10, %c0_11] : memref<192x128xf32, #tpu.memory_space<vmem>>, vector<192x128xf32>
      %14 = vector.extract_strided_slice %13 {offsets = [0, 0], sizes = [192, 1], strides = [1, 1]} : vector<192x128xf32> to vector<192x1xf32>
      %cst_12 = arith.constant 1.000000e+00 : f32
      %15 = vector.broadcast %cst_12 : f32 to vector<192x1xf32>
      %16 = arith.maximumf %14, %15 : vector<192x1xf32>
      %cst_13 = arith.constant 1.000000e+00 : f32
      %17 = vector.broadcast %cst_13 : f32 to vector<192x1xf32>
      %18 = arith.divf %17, %16 : vector<192x1xf32>
      %19 = vector.broadcast %18 : vector<192x1xf32> to vector<192x128xf32>
      %20 = arith.mulf %13, %19 : vector<192x128xf32>
      %21 = arith.truncf %20 : vector<192x128xf32> to vector<192x128xbf16>
      %c0_14 = arith.constant 0 : index
      %c0_15 = arith.constant 0 : index
      %22 = vector.load %arg4[%c0_14, %c0_15] : memref<192x128xbf16, #tpu.memory_space<vmem>>, vector<192x128xbf16>
      %c0_16 = arith.constant 0 : index
      %c0_17 = arith.constant 0 : index
      %23 = vector.load %arg5[%c0_16, %c0_17] : memref<128x128xbf16, #tpu.memory_space<vmem>>, vector<128x128xbf16>
      %cst_18 = arith.constant dense<0.000000e+00> : vector<192x128xf32>
      %24 = tpu.matmul %22, %23, %cst_18 {dimension_numbers = #tpu.dot_dimension_numbers<[1], [0], [0], [1], [0, 0, 1, 1], [], []>} : vector<192x128xbf16>, vector<128x128xbf16>, vector<192x128xf32> -> vector<192x128xf32>
      %c0_19 = arith.constant 0 : index
      %c0_20 = arith.constant 0 : index
      %25 = vector.load %arg6[%c0_19, %c0_20] : memref<128x128xbf16, #tpu.memory_space<vmem>>, vector<128x128xbf16>
      %cst_21 = arith.constant dense<0.000000e+00> : vector<192x128xf32>
      %26 = tpu.matmul %21, %25, %cst_21 {dimension_numbers = #tpu.dot_dimension_numbers<[1], [0], [0], [1], [0, 0, 1, 1], [], []>} : vector<192x128xbf16>, vector<128x128xbf16>, vector<192x128xf32> -> vector<192x128xf32>
      %27 = arith.addf %24, %26 : vector<192x128xf32>
      %cst_22 = arith.constant 0.000000e+00 : f32
      %28 = vector.broadcast %cst_22 : f32 to vector<192x128xf32>
      %29 = arith.maximumf %27, %28 : vector<192x128xf32>
      %30 = arith.truncf %29 : vector<192x128xf32> to vector<192x128xbf16>
      %c0_23 = arith.constant 0 : index
      %c0_24 = arith.constant 0 : index
      %31 = vector.load %arg7[%c0_23, %c0_24] : memref<192x128xbf16, #tpu.memory_space<vmem>>, vector<192x128xbf16>
      tpu.vector_store %arg7[%c0_23, %c0_24], %30 {strides = array<i32>} : memref<192x128xbf16, #tpu.memory_space<vmem>>, vector<192x128xbf16>,
    } else {
    }
    return
  }
  func.func @transform_0(%arg0: i32, %arg1: i32) -> (i32, i32) {
    %c0_i32 = arith.constant 0 : i32
    return %arg0, %arg1 : i32, i32
  }
  func.func @transform_1(%arg0: i32, %arg1: i32) -> (i32, i32) {
    %c0_i32 = arith.constant 0 : i32
    %c0_i32_0 = arith.constant 0 : i32
    return %arg1, %c0_i32 : i32, i32
  }
  func.func @transform_2(%arg0: i32, %arg1: i32) -> (i32, i32) {
    %c0_i32 = arith.constant 0 : i32
    %c0_i32_0 = arith.constant 0 : i32
    return %arg0, %c0_i32 : i32, i32
  }
  func.func @transform_3(%arg0: i32, %arg1: i32) -> (i32, i32) {
    %c0_i32 = arith.constant 0 : i32
    %c0_i32_0 = arith.constant 0 : i32
    %c0_i32_1 = arith.constant 0 : i32
    return %c0_i32, %c0_i32_0 : i32, i32
  }
  func.func @transform_4(%arg0: i32, %arg1: i32) -> (i32, i32) {
    %c0_i32 = arith.constant 0 : i32
    %c0_i32_0 = arith.constant 0 : i32
    %c0_i32_1 = arith.constant 0 : i32
    return %c0_i32, %c0_i32_0 : i32, i32
  }
  func.func @transform_5(%arg0: i32, %arg1: i32) -> (i32, i32) {
    %c0_i32 = arith.constant 0 : i32
    %c0_i32_0 = arith.constant 0 : i32
    return %arg0, %c0_i32 : i32, i32
  }
}

</mosaic_0001>

<bundles_post_ra>
// kernel: sage_layer_pallas.1
= control target key start
LH: loop header
LB: loop body
LE: loop exit
PB: predicated region body
PF: predicated region fallthrough
CT: control target
= control target key end

     0   :  { %s2687_s18 = smov 0   ;;  %s2689_s19 = smov 0   ;;  %s3104_s0 = inlined_call_operand.vmem [shape: s8[384,512], index: 0, kind: input, shape index: {}]   ;;  %s3105_s1 = inlined_call_operand.vmem [shape: bf16[512,128], index: 1, kind: input, shape index: {}]   ;;  %s3106_s2 = inlined_call_operand.vmem [shape: bf16[384,128], index: 2, kind: input, shape index: {}]   ;;  %s3107_s3 = inlined_call_operand.vmem [shape: bf16[128,128], index: 3, kind: input, shape index: {}]   ;;  %s3108_s4 = inlined_call_operand.vmem [shape: bf16[128,128], index: 4, kind: input, shape index: {}]   ;;  %s3109_s5 = inlined_call_operand.vmem [shape: bf16[384,128], index: 5, kind: output, shape index: {}]  }
   0x1   :  { %s2691_s20 = smov 0  }
   0x2 LB: > { %s27_s21 = sadd.s32 1, %s2650_s19  ;;  %p1974_p0 = scmp.ge.s32.totalorder %s2654_s20, 1  ;;  %s2654_s20 = sphi %s2691_s20, %s15_s20   ;;  %s2650_s19 = sphi %s2689_s19, %s3111_s19   ;;  %s2646_s18 = sphi %s2687_s18, %s3110_s18  }
   0x3   : > { %p29_p1 = scmp.ge.s32.totalorder %s27_s21, 2  ;;  %p230_p2 = scmp.lt.s32.totalorder %s2654_s20, 3 }
   0x5   : > { %s3113_s21 = smov (%p29_p1, %s27_s21), 0  ;;  %p231_p3 = pnand %p1974_p0, %p230_p2 }
   0x6   : > { %v2524_v0 = vld [vmem:[%s3105_s1 + $0x40] sm:$0xff] (!%p231_p3)   ;;  %s273_s24 = smul.u32 (!%p231_p3), 6, %s2646_s18  ;;  %v2526_v2 = vld [vmem:[%s3105_s1 + $0x48] sm:$0xff] (!%p231_p3)   ;;  %v2528_v4 = vld [vmem:[%s3105_s1 + $0x50] sm:$0xff] (!%p231_p3)  }
   0x7   : > { %234 = sbr.rel (%p231_p3) target bundleno = 807 (0x327), region = 40  ;;  %v2525_v1 = vld [vmem:[%s3105_s1] sm:$0xff] (!%p231_p3)   ;;  %2457 = vmatprep.subr.bf16.mxu1 (!%p231_p3), %v2524_v0  ;;  %2161 = vmatprep.subr.bf16.mxu0 (!%p231_p3), %v2524_v0  ;;  %v2527_v3 = vld [vmem:[%s3105_s1 + $0x8] sm:$0xff] (!%p231_p3)   ;;  %v2529_v5 = vld [vmem:[%s3105_s1 + $0x10] sm:$0xff] (!%p231_p3)  }
   0x8   : > { %p275_p4 = scmp.lt.s32.totalorder (!%p231_p3), %s273_s24, 11  ;;  %2465 = vmatpush3.bf16.msra.mxu1 (!%p231_p3), %v2525_v1  ;;  %2162 = vmatpush3.bf16.msra.mxu0 (!%p231_p3), %v2525_v1  ;;  %v2530_v6 = vld [vmem:[%s3105_s1 + $0x58] sm:$0xff] (!%p231_p3)   ;;  %v2532_v8 = vld [vmem:[%s3105_s1 + $0x60] sm:$0xff] (!%p231_p3)   ;;  %v2534_v10 = vld [vmem:[%s3105_s1 + $0x68] sm:$0xff] (!%p231_p3)   ;;  %s291_s27 = smul.u32 (!%p231_p3), 24, %s2646_s18 }
   0x9   : > { %2458 = vmatprep.subr.bf16.mxu1 (!%p231_p3), %v2526_v2  ;;  %2163 = vmatprep.subr.bf16.mxu0 (!%p231_p3), %v2526_v2  ;;  %v2531_v7 = vld [vmem:[%s3105_s1 + $0x18] sm:$0xff] (!%p231_p3)   ;;  %v2533_v9 = vld [vmem:[%s3105_s1 + $0x20] sm:$0xff] (!%p231_p3)   ;;  %v2535_v13 = vld [vmem:[%s3105_s1 + $0x28] sm:$0xff] (!%p231_p3)  }
   0xa   : > { %v2536_v14 = vld [vmem:[%s3105_s1 + $0x70] sm:$0xff] (!%p231_p3)   ;;  %v2538_v16 = vld [vmem:[%s3105_s1 + $0x78] sm:$0xff] (!%p231_p3)   ;;  %v2540_v19 = vld [vmem:[%s3105_s1 + $0xc0] sm:$0xff] (!%p231_p3)   ;;  %p292_p5 = scmp.lt.s32.totalorder (!%p231_p3), %s291_s27, 47 }
   0xb   : > { %v2537_v15 = vld [vmem:[%s3105_s1 + $0x30] sm:$0xff] (!%p231_p3)   ;;  %v2539_v17 = vld [vmem:[%s3105_s1 + $0x38] sm:$0xff] (!%p231_p3)   ;;  %v2541_v22 = vld [vmem:[%s3105_s1 + $0x80] sm:$0xff] (!%p231_p3)  }
   0xc   : > { %2466 = vmatpush3.bf16.msra.mxu1 (!%p231_p3), %v2527_v3  ;;  %2164 = vmatpush3.bf16.msra.mxu0 (!%p231_p3), %v2527_v3  ;;  %v2542_v23 = vld [vmem:[%s3105_s1 + $0xc8] sm:$0xff] (!%p231_p3)   ;;  %v2544_v30 = vld [vmem:[%s3105_s1 + $0xd0] sm:$0xff] (!%p231_p3)   ;;  %v2546_v35 = vld [vmem:[%s3105_s1 + $0xd8] sm:$0xff] (!%p231_p3)  }
   0xd   : > { %2459 = vmatprep.subr.bf16.mxu1 (!%p231_p3), %v2528_v4  ;;  %2165 = vmatprep.subr.bf16.mxu0 (!%p231_p3), %v2528_v4  ;;  %v2543_v26 = vld [vmem:[%s3105_s1 + $0x88] sm:$0xff] (!%p231_p3)   ;;  %v2545_v33 = vld [vmem:[%s3105_s1 + $0x90] sm:$0xff] (!%p231_p3)   ;;  %v2547_v38 = vld [vmem:[%s3105_s1 + $0x98] sm:$0xff] (!%p231_p3)  }
   0xe   : > { %s3115_s24 = smov (!%p275_p4, %s273_s24), 11  ;;  %v2548_v39 = vld [vmem:[%s3105_s1 + $0xe0] sm:$0xff]   ;;  %v2550_v45 = vld [vmem:[%s3105_s1 + $0xe8] sm:$0xff]   ;;  %v2552_v51 = vld [vmem:[%s3105_s1 + $0xf0] sm:$0xff]   ;;  %s3117_s27 = smov (!%p292_p5, %s291_s27), 47 }
   0xf   : > { %s2065_s12 = sshll.u32 %s3115_s24, 5  ;;  %v2549_v42 = vld [vmem:[%s3105_s1 + $0xa0] sm:$0xff]   ;;  %v2551_v48 = vld [vmem:[%s3105_s1 + $0xa8] sm:$0xff]   ;;  %v2553_v54 = vld [vmem:[%s3105_s1 + $0xb0] sm:$0xff]   ;;  %s1977_s28 = sshll.u32 %s3117_s27, 2 }
  0x10   : > { %2467 = vmatpush3.bf16.msra.mxu1 %v2529_v5  ;;  %2166 = vmatpush3.bf16.msra.mxu0 %v2529_v5  ;;  %s2738_s23 = scalar_lea.vmem %s3104_s0, %s2065_s12  ;;  %v2554_v55 = vld [vmem:[%s3105_s1 + $0xf8] sm:$0xff]   ;;  %s3016_s30 = scalar_lea.vmem %s3106_s2, %s1977_s28 }
  0x11   : > { %2460 = vmatprep.subr.bf16.mxu1 %v2530_v6  ;;  %2167 = vmatprep.subr.bf16.mxu0 %v2530_v6  ;;  %v369_v11 = vld [vmem:[%s2738_s23 + $0x68] sm:$0xff]  ;;  %v368_v18 = vld [vmem:[%s2738_s23 + $0x60] sm:$0xff]  ;;  %v2555_v59 = vld [vmem:[%s3105_s1 + $0xb8] sm:$0xff]   ;;  %s3081_s26 = scalar_lea.vmem %s3109_s5, %s1977_s28 }
  0x12   : > { %v405_v12 = vunpack.c.l.s8.bf16 %v369_v11  ;;  %v404_v20 = vunpack.c.l.s8.bf16 %v368_v18  ;;  %v409_v21 = vunpack.c.h.s8.bf16 %v369_v11  ;;  %v357_v24 = vld [vmem:[%s2738_s23 + $0x8] sm:$0xff]  ;;  %v356_v25 = vld [vmem:[%s2738_s23] sm:$0xff]  ;;  %v408_v32 = vunpack.c.h.s8.bf16 %v368_v18  ;;  %v359_v2 = vld [vmem:[%s2738_s23 + $0x18] sm:$0xff] }
  0x13   : > { %v381_v27 = vunpack.c.l.s8.bf16 %v357_v24  ;;  %v385_v28 = vunpack.c.h.s8.bf16 %v357_v24  ;;  %v380_v29 = vunpack.c.l.s8.bf16 %v356_v25  ;;  %v373_v31 = vld [vmem:[%s2738_s23 + $0x88] sm:$0xff]  ;;  %v372_v37 = vld [vmem:[%s2738_s23 + $0x80] sm:$0xff]  ;;  %v384_v40 = vunpack.c.h.s8.bf16 %v356_v25  ;;  %v358_v6 = vld [vmem:[%s2738_s23 + $0x10] sm:$0xff] }
  0x14   : > { %2468 = vmatpush3.bf16.msra.mxu1 %v2531_v7  ;;  %2168 = vmatpush3.bf16.msra.mxu0 %v2531_v7  ;;  %v413_v34 = vunpack.c.l.s8.bf16 %v373_v31  ;;  %v361_v36 = vld [vmem:[%s2738_s23 + $0x28] sm:$0xff]  ;;  %v360_v43 = vld [vmem:[%s2738_s23 + $0x20] sm:$0xff]  ;;  %v412_v44 = vunpack.c.l.s8.bf16 %v372_v37  ;;  %v417_v46 = vunpack.c.h.s8.bf16 %v373_v31  ;;  %v416_v52 = vunpack.c.h.s8.bf16 %v372_v37  ;;  %v366_v18 = vld [vmem:[%s2738_s23 + $0x50] sm:$0xff] }
  0x15   : > { %2461 = vmatprep.subr.bf16.mxu1 %v2532_v8  ;;  %2169 = vmatprep.subr.bf16.mxu0 %v2532_v8  ;;  %v389_v41 = vunpack.c.l.s8.bf16 %v361_v36  ;;  %v388_v47 = vunpack.c.l.s8.bf16 %v360_v43  ;;  %v393_v49 = vunpack.c.h.s8.bf16 %v361_v36  ;;  %v377_v50 = vld [vmem:[%s2738_s23 + $0xa8] sm:$0xff]  ;;  %v392_v57 = vunpack.c.h.s8.bf16 %v360_v43  ;;  %v376_v58 = vld [vmem:[%s2738_s23 + $0xa0] sm:$0xff]  ;;  %v370_v24 = vld [vmem:[%s2738_s23 + $0x70] sm:$0xff] }
  0x16   : > { %764 = vmatprep.mubr.bf16.mxu1 %v405_v12  ;;  %716 = vmatprep.mubr.bf16.mxu0 %v381_v27  ;;  %v421_v53 = vunpack.c.l.s8.bf16 %v377_v50  ;;  %v365_v56 = vld [vmem:[%s2738_s23 + $0x48] sm:$0xff]  ;;  %v420_v61 = vunpack.c.l.s8.bf16 %v376_v58  ;;  %v425_v62 = vunpack.c.h.s8.bf16 %v377_v50  ;;  %v364_v63 = vld [vmem:[%s2738_s23 + $0x40] sm:$0xff]  ;;  %v424_v3 = vunpack.c.h.s8.bf16 %v376_v58  ;;  %v362_v12 = vld [vmem:[%s2738_s23 + $0x30] sm:$0xff] }
  0x17   : > { %v397_v60 = vunpack.c.l.s8.bf16 %v365_v56  ;;  %v396_v0 = vunpack.c.l.s8.bf16 %v364_v63  ;;  %v401_v1 = vunpack.c.h.s8.bf16 %v365_v56  ;;  %v383_v4 = vunpack.c.l.s8.bf16 %v359_v2  ;;  %v375_v27 = vld [vmem:[%s2738_s23 + $0x98] sm:$0xff]  ;;  %v378_v36 = vld [vmem:[%s2738_s23 + $0xb0] sm:$0xff] }
  0x18   : > { %2469 = vmatpush3.bf16.msra.mxu1 %v2533_v9  ;;  %2170 = vmatpush3.bf16.msra.mxu0 %v2533_v9  ;;  %v400_v5 = vunpack.c.h.s8.bf16 %v364_v63  ;;  %v382_v7 = vunpack.c.l.s8.bf16 %v358_v6  ;;  %v387_v8 = vunpack.c.h.s8.bf16 %v359_v2  ;;  %v363_v9 = vld [vmem:[%s2738_s23 + $0x38] sm:$0xff]  ;;  %v406_v25 = vunpack.c.l.s8.bf16 %v370_v24 }
  0x19   : > { %2462 = vmatprep.subr.bf16.mxu1 %v2534_v10  ;;  %2171 = vmatprep.subr.bf16.mxu0 %v2534_v10  ;;  %v386_v10 = vunpack.c.h.s8.bf16 %v358_v6  ;;  %v391_v11 = vunpack.c.l.s8.bf16 %v363_v9  ;;  %v422_v37 = vunpack.c.l.s8.bf16 %v378_v36 }
  0x1c   : > { %2470 = vmatpush3.bf16.msra.mxu1 %v2535_v13  ;;  %2172 = vmatpush3.bf16.msra.mxu0 %v2535_v13  ;;  %v390_v13 = vunpack.c.l.s8.bf16 %v362_v12 }
  0x1d   : > { %2463 = vmatprep.subr.bf16.mxu1 %v2536_v14  ;;  %2173 = vmatprep.subr.bf16.mxu0 %v2536_v14  ;;  %v395_v14 = vunpack.c.h.s8.bf16 %v363_v9 }
  0x20   : > { %2471 = vmatpush3.bf16.msra.mxu1 %v2537_v15  ;;  %2174 = vmatpush3.bf16.msra.mxu0 %v2537_v15  ;;  %v367_v15 = vld [vmem:[%s2738_s23 + $0x58] sm:$0xff] }
  0x21   : > { %2464 = vmatprep.subr.bf16.mxu1 %v2538_v16  ;;  %2175 = vmatprep.subr.bf16.mxu0 %v2538_v16  ;;  %v394_v16 = vunpack.c.h.s8.bf16 %v362_v12 }
  0x24   : > { %2472 = vmatpush3.bf16.msra.mxu1 %v2539_v17  ;;  %2176 = vmatpush3.bf16.msra.mxu0 %v2539_v17  ;;  %v399_v17 = vunpack.c.l.s8.bf16 %v367_v15 }
  0x25   : > { %2249 = vmatprep.subr.bf16.mxu1 %v2540_v19  ;;  %v398_v19 = vunpack.c.l.s8.bf16 %v366_v18 }
  0x27   : > { %765 = vmatmul.mubr.bf16.vlgmr.msra.gmra.mrb[0].mxu1 %v404_v20  ;;  %717 = vmatmul.mubr.bf16.vlgmr.msra.gmra.mrb[0].mxu0 %v380_v29  ;;  %v403_v20 = vunpack.c.h.s8.bf16 %v367_v15  ;;  %v415_v29 = vunpack.c.l.s8.bf16 %v375_v27 }
  0x28   : > { %2250 = vmatpush3.bf16.msra.mxu1 %v2541_v22  ;;  %772 = vmatprep.mubr.bf16.mxu1 %v409_v21  ;;  %v371_v21 = vld [vmem:[%s2738_s23 + $0x78] sm:$0xff]  ;;  %v402_v22 = vunpack.c.h.s8.bf16 %v366_v18 }
  0x29   : > { %2251 = vmatprep.subr.bf16.mxu1 %v2542_v23  ;;  %724 = vmatprep.mubr.bf16.mxu0 %v385_v28  ;;  %v407_v23 = vunpack.c.l.s8.bf16 %v371_v21  ;;  %v410_v28 = vunpack.c.h.s8.bf16 %v370_v24 }
  0x2c   : > { %2252 = vmatpush3.bf16.msra.mxu1 %v2543_v26  ;;  %v411_v26 = vunpack.c.h.s8.bf16 %v371_v21  ;;  %v2556_v21 = vld [vmem:[%s3108_s4] sm:$0xff]  }
  0x2d   : > { %2253 = vmatprep.subr.bf16.mxu1 %v2544_v30  ;;  %v374_v30 = vld [vmem:[%s2738_s23 + $0x90] sm:$0xff]  ;;  %2377 = vmatprep.subr.bf16.mxu0 %v2556_v21 }
  0x2e   : > { %v414_v31 = vunpack.c.l.s8.bf16 %v374_v30  ;;  %2378 = vmatpush3.bf16.msra.mxu0 %v2556_v21 }
  0x2f   : > { %773 = vmatmul.mubr.bf16.gmra.mrb[4].mxu1 %v408_v32  ;;  %725 = vmatmul.mubr.bf16.gmra.mrb[4].mxu0 %v384_v40  ;;  %v419_v32 = vunpack.c.h.s8.bf16 %v375_v27  ;;  %v2656_v40 = vmov 0  }
  0x30   : > { %2254 = vmatpush3.bf16.msra.mxu1 %v2545_v33  ;;  %780 = vmatprep.mubr.bf16.mxu1 %v413_v34  ;;  %v379_v33 = vld [vmem:[%s2738_s23 + $0xb8] sm:$0xff]  ;;  %v418_v34 = vunpack.c.h.s8.bf16 %v374_v30 }
  0x31   : > { %2255 = vmatprep.subr.bf16.mxu1 %v2546_v35  ;;  %732 = vmatprep.mubr.bf16.mxu0 %v389_v41  ;;  %v423_v35 = vunpack.c.l.s8.bf16 %v379_v33 }
  0x32   : > { %2522 = vset.pattern.permute.xlu0 %v2656_v40  ;;  %2523 = vset.pattern.permute.xlu1 %v2656_v40 }
  0x34   : > { %2256 = vmatpush3.bf16.msra.mxu1 %v2547_v38  ;;  %v427_v38 = vunpack.c.h.s8.bf16 %v379_v33 }
  0x35   : > { %2257 = vmatprep.subr.bf16.mxu1 %v2548_v39  ;;  %v426_v39 = vunpack.c.h.s8.bf16 %v378_v36  ;;  %v2559_v36 = vld [vmem:[%s3108_s4 + $0x18] sm:$0xff]  }
  0x37   : > { %781 = vmatmul.mubr.bf16.gmra.mrb[8].mxu1 %v412_v44  ;;  %733 = vmatmul.mubr.bf16.gmra.mrb[8].mxu0 %v388_v47 }
  0x38   : > { %788 = vmatprep.mubr.bf16.mxu1 %v417_v46  ;;  %2258 = vmatpush3.bf16.msra.mxu1 %v2549_v42 }
  0x39   : > { %2259 = vmatprep.subr.bf16.mxu1 %v2550_v45  ;;  %740 = vmatprep.mubr.bf16.mxu0 %v393_v49 }
  0x3c   : > { %2260 = vmatpush3.bf16.msra.mxu1 %v2551_v48 }
  0x3d   : > { %2261 = vmatprep.subr.bf16.mxu1 %v2552_v51 }
  0x3f   : > { %789 = vmatmul.mubr.bf16.gmra.mrb[12].mxu1 %v416_v52  ;;  %741 = vmatmul.mubr.bf16.gmra.mrb[12].mxu0 %v392_v57 }
  0x40   : > { %796 = vmatprep.mubr.bf16.mxu1 %v421_v53  ;;  %2262 = vmatpush3.bf16.msra.mxu1 %v2553_v54 }
  0x41   : > { %2263 = vmatprep.subr.bf16.mxu1 %v2554_v55  ;;  %748 = vmatprep.mubr.bf16.mxu0 %v397_v60 }
  0x44   : > { %2264 = vmatpush3.bf16.msra.mxu1 %v2555_v59 }
  0x47   : > { %797 = vmatmul.mubr.bf16.gmra.mrb[16].mxu1 %v420_v61  ;;  %749 = vmatmul.mubr.bf16.gmra.mrb[16].mxu0 %v396_v0 }
  0x48   : > { %804 = vmatprep.mubr.bf16.mxu1 %v425_v62  ;;  %756 = vmatprep.mubr.bf16.mxu0 %v401_v1 }
  0x4f   : > { %805 = vmatmul.mubr.bf16.gmra.mrb[20].mxu1 %v424_v3  ;;  %757 = vmatmul.mubr.bf16.gmra.mrb[20].mxu0 %v400_v5 }
  0x50   : > { %845 = vmatprep.mubr.bf16.mxu1 %v383_v4 }
  0x57   : > { %846 = vmatmul.mubr.bf16.vlgmr.msra.gmra.mrb[24].mxu1 %v382_v7 }
  0x58   : > { %853 = vmatprep.mubr.bf16.mxu1 %v387_v8 }
  0x5f   : > { %854 = vmatmul.mubr.bf16.gmra.mrb[28].mxu1 %v386_v10 }
  0x60   : > { %861 = vmatprep.mubr.bf16.mxu1 %v391_v11 }
  0x67   : > { %862 = vmatmul.mubr.bf16.gmra.mrb[32].mxu1 %v390_v13 }
  0x68   : > { %869 = vmatprep.mubr.bf16.mxu1 %v395_v14 }
  0x6f   : > { %870 = vmatmul.mubr.bf16.gmra.mrb[36].mxu1 %v394_v16 }
  0x70   : > { %877 = vmatprep.mubr.bf16.mxu1 %v399_v17 }
  0x77   : > { %878 = vmatmul.mubr.bf16.gmra.mrb[40].mxu1 %v398_v19 }
  0x78   : > { %885 = vmatprep.mubr.bf16.mxu1 %v403_v20 }
  0x7f   : > { %886 = vmatmul.mubr.bf16.gmra.mrb[44].mxu1 %v402_v22  ;;  %v2557_v22 = vld [vmem:[%s3108_s4 + $0x8] sm:$0xff]  }
  0x80   : > { %893 = vmatprep.mubr.bf16.mxu1 %v407_v23  ;;  %2379 = vmatprep.subr.bf16.mxu0 %v2557_v22 }
  0x81   : > { %2380 = vmatpush3.bf16.msra.mxu0 %v2557_v22 }
  0x87   : > { %894 = vmatmul.mubr.bf16.gmra.mrb[48].mxu1 %v406_v25 }
  0x88   : > { %901 = vmatprep.mubr.bf16.mxu1 %v411_v26 }
  0x8f   : > { %902 = vmatmul.mubr.bf16.gmra.mrb[52].mxu1 %v410_v28 }
  0x90   : > { %909 = vmatprep.mubr.bf16.mxu1 %v415_v29  ;;  %v2558_v29 = vld [vmem:[%s3108_s4 + $0x10] sm:$0xff]  }
  0x91   : > { %2381 = vmatprep.subr.bf16.mxu0 %v2558_v29 }
  0x92   : > { %2382 = vmatpush3.bf16.msra.mxu0 %v2558_v29 }
  0x93   : > { %2383 = vmatprep.subr.bf16.mxu0 %v2559_v36 }
  0x96   : > { %2384 = vmatpush3.bf16.msra.mxu0 %v2559_v36 }
  0x97   : > { %910 = vmatmul.mubr.bf16.gmra.mrb[56].mxu1 %v414_v31 }
  0x98   : > { %917 = vmatprep.mubr.bf16.mxu1 %v419_v32 }
  0x9f   : > { %918 = vmatmul.mubr.bf16.gmra.mrb[60].mxu1 %v418_v34 }
  0xa0   : > { %925 = vmatprep.mubr.bf16.mxu1 %v423_v35 }
  0xa7   : > { %926 = vmatmul.mubr.bf16.gmra.mrb[64].mxu1 %v422_v37 }
  0xa8   : > { %933 = vmatprep.mubr.bf16.mxu1 %v427_v38 }
  0xaf   : > { %934 = vmatmul.mubr.bf16.gmra.mrb[68].mxu1 %v426_v39 }
  0xfa   : > { %v2213_v41 = vpop.f32.mrb[0].mxu1  ;;  %v2177_v47 = vpop.f32.mrb[0].mxu0 }
  0xfb   : > { %v2214_v42 = vpop.f32.mrb[1].mxu1  ;;  %v2178_v48 = vpop.f32.mrb[1].mxu0 }
  0xfc   : > { %v2833_v43 = vadd.f32 %v2214_v42, %v2213_v41  ;;  %v2216_v44 = vpop.f32.mrb[2].mxu1  ;;  %v2837_v49 = vadd.f32 %v2178_v48, %v2177_v47  ;;  %v2180_v50 = vpop.f32.mrb[2].mxu0 }
  0xfd   : > { %v2217_v45 = vpop.f32.mrb[3].mxu1  ;;  %v2181_v51 = vpop.f32.mrb[3].mxu0 }
  0xfe   : > { %v2835_v46 = vadd.f32 %v2217_v45, %v2216_v44  ;;  %v2839_v53 = vadd.f32 %v2181_v51, %v2180_v50 }
 0x102   : > { %v2219_v52 = vpop.f32.mrb[4].mxu1  ;;  %v2183_v59 = vpop.f32.mrb[4].mxu0 }
 0x103   : > { %v2220_v54 = vpop.f32.mrb[5].mxu1  ;;  %v2184_v60 = vpop.f32.mrb[5].mxu0 }
 0x104   : > { %v2841_v55 = vadd.f32 %v2220_v54, %v2219_v52  ;;  %v2222_v56 = vpop.f32.mrb[6].mxu1  ;;  %v2845_v61 = vadd.f32 %v2184_v60, %v2183_v59  ;;  %v2186_v62 = vpop.f32.mrb[6].mxu0 }
 0x105   : > { %v2223_v57 = vpop.f32.mrb[7].mxu1  ;;  %v2187_v63 = vpop.f32.mrb[7].mxu0 }
 0x106   : > { %v2843_v58 = vadd.f32 %v2223_v57, %v2222_v56  ;;  %v2847_v1 = vadd.f32 %v2187_v63, %v2186_v62 }
 0x10a   : > { %v2225_v0 = vpop.f32.mrb[8].mxu1  ;;  %v2189_v7 = vpop.f32.mrb[8].mxu0 }
 0x10b   : > { %v2226_v2 = vpop.f32.mrb[9].mxu1  ;;  %v2190_v8 = vpop.f32.mrb[9].mxu0 }
 0x10c   : > { %v2849_v3 = vadd.f32 %v2226_v2, %v2225_v0  ;;  %v2228_v4 = vpop.f32.mrb[10].mxu1  ;;  %v2853_v9 = vadd.f32 %v2190_v8, %v2189_v7  ;;  %v2192_v10 = vpop.f32.mrb[10].mxu0 }
 0x10d   : > { %v2229_v5 = vpop.f32.mrb[11].mxu1  ;;  %v2193_v11 = vpop.f32.mrb[11].mxu0 }
 0x10e   : > { %v2851_v6 = vadd.f32 %v2229_v5, %v2228_v4  ;;  %v2855_v13 = vadd.f32 %v2193_v11, %v2192_v10 }
 0x112   : > { %v2231_v12 = vpop.f32.mrb[12].mxu1  ;;  %v2195_v19 = vpop.f32.mrb[12].mxu0 }
 0x113   : > { %v2232_v14 = vpop.f32.mrb[13].mxu1  ;;  %v2196_v20 = vpop.f32.mrb[13].mxu0 }
 0x114   : > { %v2857_v15 = vadd.f32 %v2232_v14, %v2231_v12  ;;  %v2234_v16 = vpop.f32.mrb[14].mxu1  ;;  %v2867_v23 = vadd.f32 %v2196_v20, %v2195_v19  ;;  %v2198_v24 = vpop.f32.mrb[14].mxu0 }
 0x115   : > { %v2235_v17 = vpop.f32.mrb[15].mxu1  ;;  %v2199_v25 = vpop.f32.mrb[15].mxu0 }
 0x116   : > { %v2859_v18 = vadd.f32 %v2235_v17, %v2234_v16  ;;  %v2869_v27 = vadd.f32 %v2199_v25, %v2198_v24  ;;  %v2560_v24 = vld [vmem:[%s3108_s4 + $0x20] sm:$0xff]  }
 0x117   : > { %2385 = vmatprep.subr.bf16.mxu0 %v2560_v24 }
 0x118   : > { %2386 = vmatpush3.bf16.msra.mxu0 %v2560_v24 }
 0x11a   : > { %v2237_v26 = vpop.f32.mrb[16].mxu1  ;;  %v2201_v34 = vpop.f32.mrb[16].mxu0 }
 0x11b   : > { %v2238_v28 = vpop.f32.mrb[17].mxu1  ;;  %v2202_v35 = vpop.f32.mrb[17].mxu0 }
 0x11c   : > { %v2874_v30 = vadd.f32 %v2238_v28, %v2237_v26  ;;  %v2240_v31 = vpop.f32.mrb[18].mxu1  ;;  %v2881_v37 = vadd.f32 %v2202_v35, %v2201_v34  ;;  %v2204_v38 = vpop.f32.mrb[18].mxu0 }
 0x11d   : > { %v2241_v32 = vpop.f32.mrb[19].mxu1  ;;  %v2205_v39 = vpop.f32.mrb[19].mxu0 }
 0x11e   : > { %v2876_v33 = vadd.f32 %v2241_v32, %v2240_v31  ;;  %v2883_v41 = vadd.f32 %v2205_v39, %v2204_v38  ;;  %v2561_v31 = vld [vmem:[%s3108_s4 + $0x28] sm:$0xff]   ;;  %v2562_v39 = vld [vmem:[%s3108_s4 + $0x30] sm:$0xff]  }
 0x11f   : > { %2387 = vmatprep.subr.bf16.mxu0 %v2561_v31 }
 0x120   : > { %2388 = vmatpush3.bf16.msra.mxu0 %v2561_v31 }
 0x121   : > { %2389 = vmatprep.subr.bf16.mxu0 %v2562_v39 }
 0x122   : > { %v2243_v40 = vpop.f32.mrb[20].mxu1  ;;  %v2207_v50 = vpop.f32.mrb[20].mxu0 }
 0x123   : > { %v2244_v42 = vpop.f32.mrb[21].mxu1  ;;  %v2208_v51 = vpop.f32.mrb[21].mxu0 }
 0x124   : > { %v2885_v44 = vadd.f32 %v2244_v42, %v2243_v40  ;;  %v2246_v45 = vpop.f32.mrb[22].mxu1  ;;  %v2889_v52 = vadd.f32 %v2208_v51, %v2207_v50  ;;  %v2210_v54 = vpop.f32.mrb[22].mxu0  ;;  %2390 = vmatpush3.bf16.msra.mxu0 %v2562_v39  ;;  %v2563_v51 = vld [vmem:[%s3108_s4 + $0x38] sm:$0xff]  }
 0x125   : > { %v2247_v47 = vpop.f32.mrb[23].mxu1  ;;  %v2211_v56 = vpop.f32.mrb[23].mxu0  ;;  %2391 = vmatprep.subr.bf16.mxu0 %v2563_v51 }
 0x126   : > { %v2887_v48 = vadd.f32 %v2247_v47, %v2246_v45  ;;  %v2891_v59 = vadd.f32 %v2211_v56, %v2210_v54 }
 0x128   : > { %2392 = vmatpush3.bf16.msra.mxu0 %v2563_v51 }
 0x12a   : > { %v2265_v57 = vpop.f32.mrb[24].mxu1 }
 0x12b   : > { %v2266_v60 = vpop.f32.mrb[25].mxu1 }
 0x12c   : > { %v2267_v62 = vadd.f32 %v2266_v60, %v2265_v57  ;;  %v2268_v63 = vpop.f32.mrb[26].mxu1 }
 0x12d   : > { %v2269_v0 = vpop.f32.mrb[27].mxu1 }
 0x12e   : > { %v2894_v2 = vadd.f32 %v2267_v62, %v2837_v49  ;;  %v2270_v4 = vadd.f32 %v2269_v0, %v2268_v63 }
 0x130   : > { %v1017_v5 = vmax.f32 %v2894_v2, 1.0  ;;  %v2898_v7 = vadd.f32 %v2270_v4, %v2839_v53 }
 0x132   : > { %2584 = vrcp.f32 %v1017_v5  ;;  %v1018_v8 = vmax.f32 %v2898_v7, 1.0  ;;  %v2271_v10 = vpop.f32.mrb[28].mxu1 }
 0x133   : > { %v2272_v11 = vpop.f32.mrb[29].mxu1 }
 0x134   : > { %v2273_v12 = vadd.f32 %v2272_v11, %v2271_v10  ;;  %v2274_v14 = vpop.f32.mrb[30].mxu1  ;;  %2586 = vrcp.f32 %v1018_v8 }
 0x135   : > { %v2275_v16 = vpop.f32.mrb[31].mxu1 }
 0x136   : > { %v2902_v17 = vadd.f32 %v2273_v12, %v2845_v61  ;;  %v2276_v49 = vadd.f32 %v2275_v16, %v2274_v14 }
 0x138   : > { %v1019_v19 = vmax.f32 %v2902_v17, 1.0  ;;  %v2906_v20 = vadd.f32 %v2276_v49, %v2847_v1 }
 0x13a   : > { %2588 = vrcp.f32 %v1019_v19  ;;  %v1020_v53 = vmax.f32 %v2906_v20, 1.0  ;;  %v2277_v21 = vpop.f32.mrb[32].mxu1 }
 0x13b   : > { %v2278_v22 = vpop.f32.mrb[33].mxu1 }
 0x13c   : > { %v2585_v25 = vpop.eup %2584  ;;  %v2279_v26 = vadd.f32 %v2278_v22, %v2277_v21  ;;  %v2280_v28 = vpop.f32.mrb[34].mxu1  ;;  %2590 = vrcp.f32 %v1020_v53 }
 0x13d   : > { %v2281_v61 = vpop.f32.mrb[35].mxu1  ;;  %1091 = vperm.xlu0 %2522, %v2585_v25  }
 0x13e   : > { %v2913_v29 = vadd.f32 %v2279_v26, %v2853_v9  ;;  %v2282_v1 = vadd.f32 %v2281_v61, %v2280_v28  ;;  %v2587_v32 = vpop.eup %2586 }
 0x140   : > { %v1021_v34 = vmax.f32 %v2913_v29, 1.0  ;;  %v2920_v35 = vadd.f32 %v2282_v1, %v2855_v13 }
 0x141   : > { %1096 = vperm.xlu0 %2522, %v2587_v32  }
 0x142   : > { %2592 = vrcp.f32 %v1021_v34  ;;  %v1022_v36 = vmax.f32 %v2920_v35, 1.0  ;;  %v2283_v38 = vpop.f32.mrb[36].mxu1 }
 0x143   : > { %v2284_v9 = vpop.f32.mrb[37].mxu1 }
 0x144   : > { %v2589_v40 = vpop.eup %2588  ;;  %2594 = vrcp.f32 %v1022_v36  ;;  %v2285_v42 = vadd.f32 %v2284_v9, %v2283_v38  ;;  %v2286_v45 = vpop.f32.mrb[38].mxu1 }
 0x145   : > { %v2287_v47 = vpop.f32.mrb[39].mxu1  ;;  %1101 = vperm.xlu1 %2523, %v2589_v40  }
 0x146   : > { %v2927_v13 = vadd.f32 %v2285_v42, %v2867_v23  ;;  %v2288_v50 = vadd.f32 %v2287_v47, %v2286_v45  ;;  %v2591_v54 = vpop.eup %2590 }
 0x148   : > { %v1023_v56 = vmax.f32 %v2927_v13, 1.0  ;;  %v2934_v57 = vadd.f32 %v2288_v50, %v2869_v27 }
 0x149   : > { %1106 = vperm.xlu1 %2523, %v2591_v54  }
 0x14a   : > { %2596 = vrcp.f32 %v1023_v56  ;;  %v1024_v60 = vmax.f32 %v2934_v57, 1.0  ;;  %v2289_v62 = vpop.f32.mrb[40].mxu1 }
 0x14b   : > { %v2290_v23 = vpop.f32.mrb[41].mxu1 }
 0x14c   : > { %v2593_v63 = vpop.eup %2592  ;;  %2598 = vrcp.f32 %v1024_v60  ;;  %v2291_v0 = vadd.f32 %v2290_v23, %v2289_v62  ;;  %v2292_v4 = vpop.f32.mrb[42].mxu1 }
 0x14d   : > { %v2293_v5 = vpop.f32.mrb[43].mxu1  ;;  %1111 = vperm.xlu0 %2522, %v2593_v63  }
 0x14e   : > { %v2595_v8 = vpop.eup %2594  ;;  %v2938_v10 = vadd.f32 %v2291_v0, %v2881_v37  ;;  %v2294_v27 = vadd.f32 %v2293_v5, %v2292_v4 }
 0x14f   : > { %1116 = vperm.xlu1 %2523, %v2595_v8  }
 0x150   : > { %v1025_v11 = vmax.f32 %v2938_v10, 1.0  ;;  %v2942_v12 = vadd.f32 %v2294_v27, %v2883_v41 }
 0x152   : > { %2600 = vrcp.f32 %v1025_v11  ;;  %v1026_v14 = vmax.f32 %v2942_v12, 1.0  ;;  %v2295_v16 = vpop.f32.mrb[44].mxu1 }
 0x153   : > { %v2296_v49 = vpop.f32.mrb[45].mxu1 }
 0x154   : > { %v2597_v19 = vpop.eup %2596  ;;  %2602 = vrcp.f32 %v1026_v14  ;;  %v2297_v53 = vadd.f32 %v2296_v49, %v2295_v16  ;;  %v2298_v21 = vpop.f32.mrb[46].mxu1 }
 0x155   : > { %v2299_v22 = vpop.f32.mrb[47].mxu1  ;;  %1121 = vperm.xlu0 %2522, %v2597_v19  }
 0x156   : > { %v2599_v37 = vpop.eup %2598  ;;  %v2946_v24 = vadd.f32 %v2297_v53, %v2889_v52  ;;  %v2300_v25 = vadd.f32 %v2299_v22, %v2298_v21  ;;  %v2980_v21 = vld [vmem:[%s3107_s3] sm:$0xff]  }
 0x157   : > { %1126 = vperm.xlu1 %2523, %v2599_v37   ;;  %2417 = vmatprep.subr.bf16.mxu0 %v2980_v21 }
 0x158   : > { %v1027_v41 = vmax.f32 %v2946_v24, 1.0  ;;  %v2950_v26 = vadd.f32 %v2300_v25, %v2891_v59 }
 0x15a   : > { %2604 = vrcp.f32 %v1027_v41  ;;  %v1028_v28 = vmax.f32 %v2950_v26, 1.0  ;;  %v2301_v61 = vpop.f32.mrb[48].mxu1 }
 0x15b   : > { %v2302_v1 = vpop.f32.mrb[49].mxu1 }
 0x15c   : > { %v2601_v31 = vpop.eup %2600  ;;  %2606 = vrcp.f32 %v1028_v28  ;;  %v2303_v32 = vadd.f32 %v2302_v1, %v2301_v61  ;;  %v2304_v34 = vpop.f32.mrb[50].mxu1 }
 0x15d   : > { %v2305_v36 = vpop.f32.mrb[51].mxu1  ;;  %1131 = vperm.xlu0 %2522, %v2601_v31  }
 0x15e   : > { %v2603_v52 = vpop.eup %2602  ;;  %v2954_v38 = vadd.f32 %v2303_v32, %v2833_v43  ;;  %v2306_v9 = vadd.f32 %v2305_v36, %v2304_v34 }
 0x15f   : > { %1136 = vperm.xlu1 %2523, %v2603_v52  }
 0x160   : > { %v1029_v59 = vmax.f32 %v2954_v38, 1.0  ;;  %v2958_v39 = vadd.f32 %v2306_v9, %v2835_v46 }
 0x162   : > { %2608 = vrcp.f32 %v1029_v59  ;;  %v1030_v40 = vmax.f32 %v2958_v39, 1.0  ;;  %v2307_v42 = vpop.f32.mrb[52].mxu1 }
 0x163   : > { %v2308_v45 = vpop.f32.mrb[53].mxu1 }
 0x164   : > { %v2605_v47 = vpop.eup %2604  ;;  %2610 = vrcp.f32 %v1030_v40  ;;  %v2309_v50 = vadd.f32 %v2308_v45, %v2307_v42  ;;  %v2310_v51 = vpop.f32.mrb[54].mxu1 }
 0x165   : > { %v2311_v54 = vpop.f32.mrb[55].mxu1  ;;  %1141 = vperm.xlu0 %2522, %v2605_v47  }
 0x166   : > { %v2607_v43 = vpop.eup %2606  ;;  %v2962_v56 = vadd.f32 %v2309_v50, %v2841_v55  ;;  %v2312_v60 = vadd.f32 %v2311_v54, %v2310_v51 }
 0x167   : > { %1146 = vperm.xlu1 %2523, %v2607_v43  }
 0x168   : > { %v1031_v46 = vmax.f32 %v2962_v56, 1.0  ;;  %v2966_v62 = vadd.f32 %v2312_v60, %v2843_v58 }
 0x16a   : > { %2612 = vrcp.f32 %v1031_v46  ;;  %v1032_v23 = vmax.f32 %v2966_v62, 1.0  ;;  %v2313_v63 = vpop.f32.mrb[56].mxu1 }
 0x16b   : > { %v2314_v0 = vpop.f32.mrb[57].mxu1 }
 0x16c   : > { %v2609_v4 = vpop.eup %2608  ;;  %2614 = vrcp.f32 %v1032_v23  ;;  %v2315_v5 = vadd.f32 %v2314_v0, %v2313_v63  ;;  %v2316_v8 = vpop.f32.mrb[58].mxu1 }
 0x16d   : > { %v2317_v27 = vpop.f32.mrb[59].mxu1  ;;  %1151 = vperm.xlu0 %2522, %v2609_v4  }
 0x16e   : > { %v2611_v55 = vpop.eup %2610  ;;  %v2970_v11 = vadd.f32 %v2315_v5, %v2849_v3  ;;  %v2318_v14 = vadd.f32 %v2317_v27, %v2316_v8 }
 0x16f   : > { %1156 = vperm.xlu1 %2523, %v2611_v55  }
 0x170   : > { %v1033_v58 = vmax.f32 %v2970_v11, 1.0  ;;  %v2974_v16 = vadd.f32 %v2318_v14, %v2851_v6 }
 0x172   : > { %2616 = vrcp.f32 %v1033_v58  ;;  %v1034_v49 = vmax.f32 %v2974_v16, 1.0  ;;  %v2319_v19 = vpop.f32.mrb[60].mxu1 }
 0x173   : > { %v2320_v53 = vpop.f32.mrb[61].mxu1 }
 0x174   : > { %v2613_v22 = vpop.eup %2612  ;;  %2618 = vrcp.f32 %v1034_v49  ;;  %v2321_v3 = vadd.f32 %v2320_v53, %v2319_v19  ;;  %v2322_v37 = vpop.f32.mrb[62].mxu1 }
 0x175   : > { %v2323_v25 = vpop.f32.mrb[63].mxu1  ;;  %1161 = vperm.xlu0 %2522, %v2613_v22  }
 0x176   : > { %v2615_v6 = vpop.eup %2614  ;;  %v2984_v41 = vadd.f32 %v2321_v3, %v2857_v15  ;;  %v2324_v28 = vadd.f32 %v2323_v25, %v2322_v37  ;;  %v2565_v25 = vld [vmem:[%s3107_s3 + $0x8] sm:$0xff]  }
 0x177   : > { %1166 = vperm.xlu1 %2523, %v2615_v6  }
 0x178   : > { %v1035_v61 = vmax.f32 %v2984_v41, 1.0  ;;  %v2988_v1 = vadd.f32 %v2324_v28, %v2859_v18 }
 0x17a   : > { %2620 = vrcp.f32 %v1035_v61  ;;  %v1036_v31 = vmax.f32 %v2988_v1, 1.0  ;;  %v2325_v32 = vpop.f32.mrb[64].mxu1  ;;  %v2567_v61 = vld [vmem:[%s3107_s3 + $0x18] sm:$0xff]  }
 0x17b   : > { %v2326_v34 = vpop.f32.mrb[65].mxu1 }
 0x17c   : > { %v2617_v36 = vpop.eup %2616  ;;  %2622 = vrcp.f32 %v1036_v31  ;;  %v2327_v52 = vadd.f32 %v2326_v34, %v2325_v32  ;;  %v2328_v9 = vpop.f32.mrb[66].mxu1 }
 0x17d   : > { %v2329_v59 = vpop.f32.mrb[67].mxu1  ;;  %1171 = vperm.xlu0 %2522, %v2617_v36   ;;  %v2569_v36 = vld [vmem:[%s3107_s3 + $0x28] sm:$0xff]  }
 0x17e   : > { %v2619_v15 = vpop.eup %2618  ;;  %v2992_v40 = vadd.f32 %v2327_v52, %v2874_v30  ;;  %v2330_v42 = vadd.f32 %v2329_v59, %v2328_v9  ;;  %v2570_v59 = vld [vmem:[%s3107_s3 + $0x30] sm:$0xff]  }
 0x17f   : > { %1176 = vperm.xlu1 %2523, %v2619_v15  }
 0x180   : > { %v1037_v18 = vmax.f32 %v2992_v40, 1.0  ;;  %v2996_v45 = vadd.f32 %v2330_v42, %v2876_v33  ;;  %v2571_v42 = vld [vmem:[%s3107_s3 + $0x38] sm:$0xff]  }
 0x182   : > { %2624 = vrcp.f32 %v1037_v18  ;;  %v1038_v47 = vmax.f32 %v2996_v45, 1.0  ;;  %v2331_v50 = vpop.f32.mrb[68].mxu1 }
 0x183   : > { %v2332_v51 = vpop.f32.mrb[69].mxu1 }
 0x184   : > { %v2621_v54 = vpop.eup %2620  ;;  %2626 = vrcp.f32 %v1038_v47  ;;  %v2333_v43 = vadd.f32 %v2332_v51, %v2331_v50  ;;  %v2334_v60 = vpop.f32.mrb[70].mxu1 }
 0x185   : > { %v2335_v46 = vpop.f32.mrb[71].mxu1  ;;  %1181 = vperm.xlu0 %2522, %v2621_v54  }
 0x186   : > { %v2623_v30 = vpop.eup %2622  ;;  %v3000_v23 = vadd.f32 %v2333_v43, %v2885_v44  ;;  %v2336_v63 = vadd.f32 %v2335_v46, %v2334_v60 }
 0x187   : > { %1186 = vperm.xlu1 %2523, %v2623_v30  }
 0x188   : > { %v1039_v33 = vmax.f32 %v3000_v23, 1.0  ;;  %v3004_v0 = vadd.f32 %v2336_v63, %v2887_v48 }
 0x18a   : > { %2628 = vrcp.f32 %v1039_v33  ;;  %v1040_v4 = vmax.f32 %v3004_v0, 1.0 }
 0x18c   : > { %v2625_v5 = vpop.eup %2624  ;;  %2630 = vrcp.f32 %v1040_v4 }
 0x18d   : > { %1191 = vperm.xlu0 %2522, %v2625_v5  }
 0x18e   : > { %v2627_v8 = vpop.eup %2626 }
 0x18f   : > { %1196 = vperm.xlu1 %2523, %v2627_v8  }
 0x194   : > { %v2629_v27 = vpop.eup %2628 }
 0x195   : > { %1201 = vperm.xlu0 %2522, %v2629_v27  }
 0x196   : > { %v2631_v44 = vpop.eup %2630 }
 0x197   : > { %1206 = vperm.xlu1 %2523, %v2631_v44  }
 0x1bc   : > { %v1092_v48 = vpop.permute.xlu0 %1091 }
 0x1bd   : > { %v1209_v14 = vmul.f32 %v1092_v48, %v2894_v2 }
 0x1c0   : > { %v1097_v55 = vpop.permute.xlu0 %1096 }
 0x1c1   : > { %v1210_v58 = vmul.f32 %v1097_v55, %v2898_v7 }
 0x1c3   : > { %v1233_v49 = vpack.c.bf16 %v1210_v58, %v1209_v14 }
 0x1c4   : > { %v1102_v19 = vpop.permute.xlu1 %1101 }
 0x1c5   : > { %2393 = vmatprep.mubr.bf16.mxu0 %v1233_v49  ;;  %v1211_v22 = vmul.f32 %v1102_v19, %v2902_v17  ;;  %v2566_v17 = vld [vmem:[%s3107_s3 + $0x10] sm:$0xff]  }
 0x1c8   : > { %v1107_v53 = vpop.permute.xlu1 %1106 }
 0x1c9   : > { %v1212_v3 = vmul.f32 %v1107_v53, %v2906_v20  ;;  %v2572_v53 = vld [vmem:[%s3016_s30] sm:$0xff]  }
 0x1cb   : > { %v1234_v37 = vpack.c.bf16 %v1212_v3, %v1211_v22  ;;  %v2575_v3 = vld [vmem:[%s3016_s30 + $0x18] sm:$0xff]  }
 0x1cc   : > { %v1112_v6 = vpop.permute.xlu0 %1111 }
 0x1cd   : > { %2394 = vmatmul.mubr.bf16.vlgmr.msra.gmra.mrb[24].mxu0 %v1234_v37  ;;  %v1213_v2 = vmul.f32 %v1112_v6, %v2913_v29  ;;  %v2576_v37 = vld [vmem:[%s3016_s30 + $0x20] sm:$0xff]  }
 0x1ce   : > { %v1117_v28 = vpop.permute.xlu1 %1116  ;;  %2418 = vmatpush3.bf16.msra.mxu0 %v2980_v21  ;;  %v2568_v21 = vld [vmem:[%s3107_s3 + $0x20] sm:$0xff]  }
 0x1cf   : > { %v1214_v7 = vmul.f32 %v1117_v28, %v2920_v35  ;;  %2419 = vmatprep.subr.bf16.mxu0 %v2565_v25  ;;  %v2580_v6 = vld [vmem:[%s3016_s30 + $0x40] sm:$0xff]   ;;  %v2581_v28 = vld [vmem:[%s3016_s30 + $0x48] sm:$0xff]  }
 0x1d1   : > { %v1235_v20 = vpack.c.bf16 %v1214_v7, %v1213_v2  ;;  %v2582_v2 = vld [vmem:[%s3016_s30 + $0x50] sm:$0xff]   ;;  %v2583_v7 = vld [vmem:[%s3016_s30 + $0x58] sm:$0xff]  }
 0x1d2   : > { %2420 = vmatpush3.bf16.msra.mxu0 %v2565_v25  ;;  %v2578_v25 = vld [vmem:[%s3016_s30 + $0x30] sm:$0xff]  }
 0x1d3   : > { %2397 = vmatprep.mubr.bf16.mxu0 %v1235_v20  ;;  %2421 = vmatprep.subr.bf16.mxu0 %v2566_v17 }
 0x1d4   : > { %v1122_v31 = vpop.permute.xlu0 %1121 }
 0x1d5   : > { %v1215_v29 = vmul.f32 %v1122_v31, %v2927_v13 }
 0x1d6   : > { %v1127_v32 = vpop.permute.xlu1 %1126  ;;  %2422 = vmatpush3.bf16.msra.mxu0 %v2566_v17 }
 0x1d7   : > { %v1216_v35 = vmul.f32 %v1127_v32, %v2934_v57  ;;  %2423 = vmatprep.subr.bf16.mxu0 %v2567_v61 }
 0x1d9   : > { %v1236_v34 = vpack.c.bf16 %v1216_v35, %v1215_v29 }
 0x1da   : > { %2424 = vmatpush3.bf16.msra.mxu0 %v2567_v61 }
 0x1db   : > { %2398 = vmatmul.mubr.bf16.gmra.mrb[28].mxu0 %v1236_v34  ;;  %2425 = vmatprep.subr.bf16.mxu0 %v2568_v21 }
 0x1dc   : > { %v1132_v52 = vpop.permute.xlu0 %1131 }
 0x1dd   : > { %v1217_v13 = vmul.f32 %v1132_v52, %v2938_v10 }
 0x1de   : > { %v1137_v9 = vpop.permute.xlu1 %1136  ;;  %2426 = vmatpush3.bf16.msra.mxu0 %v2568_v21 }
 0x1df   : > { %v1218_v57 = vmul.f32 %v1137_v9, %v2942_v12  ;;  %2427 = vmatprep.subr.bf16.mxu0 %v2569_v36 }
 0x1e1   : > { %v1237_v15 = vpack.c.bf16 %v1218_v57, %v1217_v13 }
 0x1e2   : > { %2428 = vmatpush3.bf16.msra.mxu0 %v2569_v36 }
 0x1e3   : > { %2401 = vmatprep.mubr.bf16.mxu0 %v1237_v15  ;;  %2429 = vmatprep.subr.bf16.mxu0 %v2570_v59 }
 0x1e4   : > { %v1142_v18 = vpop.permute.xlu0 %1141 }
 0x1e5   : > { %v1219_v10 = vmul.f32 %v1142_v18, %v2946_v24 }
 0x1e6   : > { %v1147_v47 = vpop.permute.xlu1 %1146  ;;  %2430 = vmatpush3.bf16.msra.mxu0 %v2570_v59 }
 0x1e7   : > { %v1220_v12 = vmul.f32 %v1147_v47, %v2950_v26  ;;  %2431 = vmatprep.subr.bf16.mxu0 %v2571_v42 }
 0x1e9   : > { %v1238_v50 = vpack.c.bf16 %v1220_v12, %v1219_v10 }
 0x1ea   : > { %2432 = vmatpush3.bf16.msra.mxu0 %v2571_v42 }
 0x1eb   : > { %2402 = vmatmul.mubr.bf16.gmra.mrb[32].mxu0 %v1238_v50 }
 0x1ec   : > { %v1152_v51 = vpop.permute.xlu0 %1151 }
 0x1ed   : > { %v1221_v43 = vmul.f32 %v1152_v51, %v2954_v38 }
 0x1ee   : > { %v1157_v54 = vpop.permute.xlu1 %1156 }
 0x1ef   : > { %v1222_v60 = vmul.f32 %v1157_v54, %v2958_v39 }
 0x1f1   : > { %v1239_v46 = vpack.c.bf16 %v1222_v60, %v1221_v43 }
 0x1f3   : > { %2405 = vmatprep.mubr.bf16.mxu0 %v1239_v46 }
 0x1f4   : > { %v1162_v30 = vpop.permute.xlu0 %1161 }
 0x1f5   : > { %v1223_v33 = vmul.f32 %v1162_v30, %v2962_v56 }
 0x1f6   : > { %v1167_v63 = vpop.permute.xlu1 %1166 }
 0x1f7   : > { %v1224_v24 = vmul.f32 %v1167_v63, %v2966_v62 }
 0x1f9   : > { %v1240_v4 = vpack.c.bf16 %v1224_v24, %v1223_v33 }
 0x1fb   : > { %2406 = vmatmul.mubr.bf16.gmra.mrb[36].mxu0 %v1240_v4 }
 0x1fc   : > { %v1172_v26 = vpop.permute.xlu0 %1171 }
 0x1fd   : > { %v1225_v8 = vmul.f32 %v1172_v26, %v2970_v11 }
 0x1fe   : > { %v1177_v5 = vpop.permute.xlu1 %1176 }
 0x1ff   : > { %v1226_v27 = vmul.f32 %v1177_v5, %v2974_v16 }
 0x201   : > { %v1241_v44 = vpack.c.bf16 %v1226_v27, %v1225_v8 }
 0x203   : > { %2409 = vmatprep.mubr.bf16.mxu0 %v1241_v44 }
 0x204   : > { %v1182_v38 = vpop.permute.xlu0 %1181 }
 0x205   : > { %v1227_v48 = vmul.f32 %v1182_v38, %v2984_v41 }
 0x206   : > { %v1187_v39 = vpop.permute.xlu1 %1186 }
 0x207   : > { %v1228_v55 = vmul.f32 %v1187_v39, %v2988_v1 }
 0x209   : > { %v1242_v56 = vpack.c.bf16 %v1228_v55, %v1227_v48 }
 0x20b   : > { %2410 = vmatmul.mubr.bf16.gmra.mrb[40].mxu0 %v1242_v56 }
 0x20c   : > { %v1192_v62 = vpop.permute.xlu0 %1191 }
 0x20d   : > { %v1229_v58 = vmul.f32 %v1192_v62, %v2992_v40  ;;  %v2573_v40 = vld [vmem:[%s3016_s30 + $0x8] sm:$0xff]  }
 0x20e   : > { %v1197_v14 = vpop.permute.xlu1 %1196 }
 0x20f   : > { %v1230_v11 = vmul.f32 %v1197_v14, %v2996_v45  ;;  %v2574_v45 = vld [vmem:[%s3016_s30 + $0x10] sm:$0xff]  }
 0x211   : > { %v1243_v16 = vpack.c.bf16 %v1230_v11, %v1229_v58 }
 0x213   : > { %2413 = vmatprep.mubr.bf16.mxu0 %v1243_v16 }
 0x214   : > { %v1202_v49 = vpop.permute.xlu0 %1201 }
 0x215   : > { %v1231_v41 = vmul.f32 %v1202_v49, %v3000_v23  ;;  %v2577_v23 = vld [vmem:[%s3016_s30 + $0x28] sm:$0xff]  }
 0x216   : > { %v1207_v19 = vpop.permute.xlu1 %1206 }
 0x217   : > { %v1232_v1 = vmul.f32 %v1207_v19, %v3004_v0  ;;  %v2579_v0 = vld [vmem:[%s3016_s30 + $0x38] sm:$0xff]  }
 0x219   : > { %v1244_v22 = vpack.c.bf16 %v1232_v1, %v1231_v41 }
 0x21b   : > { %2414 = vmatmul.mubr.bf16.gmra.mrb[44].mxu0 %v1244_v22 }
 0x21c   : > { %2433 = vmatprep.mubr.bf16.mxu0 %v2572_v53 }
 0x223   : > { %2434 = vmatmul.mubr.bf16.vlgmr.msra.gmra.mrb[24].mxu0 %v2573_v40 }
 0x224   : > { %2437 = vmatprep.mubr.bf16.mxu0 %v2574_v45 }
 0x22b   : > { %2438 = vmatmul.mubr.bf16.gmra.mrb[28].mxu0 %v2575_v3 }
 0x22c   : > { %2441 = vmatprep.mubr.bf16.mxu0 %v2576_v37 }
 0x233   : > { %2442 = vmatmul.mubr.bf16.gmra.mrb[32].mxu0 %v2577_v23 }
 0x234   : > { %2445 = vmatprep.mubr.bf16.mxu0 %v2578_v25 }
 0x23b   : > { %2446 = vmatmul.mubr.bf16.gmra.mrb[36].mxu0 %v2579_v0 }
 0x23c   : > { %2449 = vmatprep.mubr.bf16.mxu0 %v2580_v6 }
 0x243   : > { %2450 = vmatmul.mubr.bf16.gmra.mrb[40].mxu0 %v2581_v28 }
 0x244   : > { %2453 = vmatprep.mubr.bf16.mxu0 %v2582_v2 }
 0x24b   : > { %2454 = vmatmul.mubr.bf16.gmra.mrb[44].mxu0 %v2583_v7 }
 0x2f6   : > { %v2435_v17 = vpop.f32.mrb[24].mxu0 }
 0x2f7   : > { %v1632_v20 = vpop.f32.mrb[25].mxu0  ;;  %v1729_v31 = vmax.f32 %v2435_v17, 0.0 }
 0x2f8   : > { %v2436_v61 = vpop.f32.mrb[26].mxu0  ;;  %v1727_v35 = vmax.f32 %v1632_v20, 0.0 }
 0x2f9   : > { %v1730_v32 = vmax.f32 %v2436_v61, 0.0  ;;  %v1635_v29 = vpop.f32.mrb[27].mxu0 }
 0x2fa   : > { %v1728_v21 = vmax.f32 %v1635_v29, 0.0 }
 0x2fb   : > { %v2098_v34 = vpack.c.bf16 %v1730_v32, %v1729_v31 }
 0x2fc   : > { %v2093_v36 = vpack.c.bf16 %v1728_v21, %v1727_v35 }
 0x2fd   : > { %2150 = vst [vmem:[%s3081_s26 + $0x8] sm:$0xff] %v2098_v34  }
 0x2fe   : > { %2094 = vst [vmem:[%s3081_s26] sm:$0xff] %v2093_v36   ;;  %v2439_v52 = vpop.f32.mrb[28].mxu0 }
 0x2ff   : > { %v1648_v9 = vpop.f32.mrb[29].mxu0  ;;  %v1733_v57 = vmax.f32 %v2439_v52, 0.0 }
 0x300   : > { %v2440_v13 = vpop.f32.mrb[30].mxu0  ;;  %v1731_v42 = vmax.f32 %v1648_v9, 0.0 }
 0x301   : > { %v1734_v59 = vmax.f32 %v2440_v13, 0.0  ;;  %v1651_v15 = vpop.f32.mrb[31].mxu0 }
 0x302   : > { %v1732_v18 = vmax.f32 %v1651_v15, 0.0 }
 0x303   : > { %v2108_v47 = vpack.c.bf16 %v1734_v59, %v1733_v57 }
 0x304   : > { %v2103_v10 = vpack.c.bf16 %v1732_v18, %v1731_v42 }
 0x305   : > { %2152 = vst [vmem:[%s3081_s26 + $0x18] sm:$0xff] %v2108_v47  }
 0x306   : > { %2151 = vst [vmem:[%s3081_s26 + $0x10] sm:$0xff] %v2103_v10   ;;  %v2443_v12 = vpop.f32.mrb[32].mxu0 }
 0x307   : > { %v1664_v50 = vpop.f32.mrb[33].mxu0  ;;  %v1737_v54 = vmax.f32 %v2443_v12, 0.0 }
 0x308   : > { %v2444_v51 = vpop.f32.mrb[34].mxu0  ;;  %v1735_v46 = vmax.f32 %v1664_v50, 0.0 }
 0x309   : > { %v1738_v43 = vmax.f32 %v2444_v51, 0.0  ;;  %v1667_v60 = vpop.f32.mrb[35].mxu0 }
 0x30a   : > { %v1736_v30 = vmax.f32 %v1667_v60, 0.0 }
 0x30b   : > { %v2118_v63 = vpack.c.bf16 %v1738_v43, %v1737_v54 }
 0x30c   : > { %v2113_v33 = vpack.c.bf16 %v1736_v30, %v1735_v46 }
 0x30d   : > { %2154 = vst [vmem:[%s3081_s26 + $0x28] sm:$0xff] %v2118_v63  }
 0x30e   : > { %2153 = vst [vmem:[%s3081_s26 + $0x20] sm:$0xff] %v2113_v33   ;;  %v2447_v24 = vpop.f32.mrb[36].mxu0 }
 0x30f   : > { %v1680_v4 = vpop.f32.mrb[37].mxu0  ;;  %v1741_v5 = vmax.f32 %v2447_v24, 0.0 }
 0x310   : > { %v2448_v26 = vpop.f32.mrb[38].mxu0  ;;  %v1739_v44 = vmax.f32 %v1680_v4, 0.0 }
 0x311   : > { %v1742_v8 = vmax.f32 %v2448_v26, 0.0  ;;  %v1683_v27 = vpop.f32.mrb[39].mxu0 }
 0x312   : > { %v1740_v38 = vmax.f32 %v1683_v27, 0.0 }
 0x313   : > { %v2128_v39 = vpack.c.bf16 %v1742_v8, %v1741_v5 }
 0x314   : > { %v2123_v48 = vpack.c.bf16 %v1740_v38, %v1739_v44 }
 0x315   : > { %2156 = vst [vmem:[%s3081_s26 + $0x38] sm:$0xff] %v2128_v39  }
 0x316   : > { %2155 = vst [vmem:[%s3081_s26 + $0x30] sm:$0xff] %v2123_v48   ;;  %v2451_v55 = vpop.f32.mrb[40].mxu0 }
 0x317   : > { %v1696_v56 = vpop.f32.mrb[41].mxu0  ;;  %v1745_v14 = vmax.f32 %v2451_v55, 0.0 }
 0x318   : > { %v2452_v62 = vpop.f32.mrb[42].mxu0  ;;  %v1743_v16 = vmax.f32 %v1696_v56, 0.0 }
 0x319   : > { %v1746_v58 = vmax.f32 %v2452_v62, 0.0  ;;  %v1699_v11 = vpop.f32.mrb[43].mxu0 }
 0x31a   : > { %v1744_v49 = vmax.f32 %v1699_v11, 0.0 }
 0x31b   : > { %v2138_v19 = vpack.c.bf16 %v1746_v58, %v1745_v14 }
 0x31c   : > { %v2133_v41 = vpack.c.bf16 %v1744_v49, %v1743_v16 }
 0x31d   : > { %2158 = vst [vmem:[%s3081_s26 + $0x48] sm:$0xff] %v2138_v19  }
 0x31e   : > { %2157 = vst [vmem:[%s3081_s26 + $0x40] sm:$0xff] %v2133_v41   ;;  %v2455_v1 = vpop.f32.mrb[44].mxu0 }
 0x31f   : > { %v1712_v53 = vpop.f32.mrb[45].mxu0  ;;  %v1749_v40 = vmax.f32 %v2455_v1, 0.0 }
 0x320   : > { %v2456_v22 = vpop.f32.mrb[46].mxu0  ;;  %v1747_v37 = vmax.f32 %v1712_v53, 0.0 }
 0x321   : > { %v1750_v45 = vmax.f32 %v2456_v22, 0.0  ;;  %v1715_v3 = vpop.f32.mrb[47].mxu0 }
 0x322   : > { %v1748_v23 = vmax.f32 %v1715_v3, 0.0 }
 0x323   : > { %v2148_v25 = vpack.c.bf16 %v1750_v45, %v1749_v40 }
 0x324   : > { %v2143_v0 = vpack.c.bf16 %v1748_v23, %v1747_v37 }
 0x325   : > { %2160 = vst [vmem:[%s3081_s26 + $0x58] sm:$0xff] %v2148_v25  }
 0x326   : > { %2159 = vst [vmem:[%s3081_s26 + $0x50] sm:$0xff] %v2143_v0  }
 0x327 PF: > { %s15_s20 = sadd.s32 1, %s2654_s20   ;;  %s3110_s18 = smov %s2650_s19 }
 0x328   : > { %p12_p6 = scmp.ge.s32.totalorder %s15_s20, 4   ;;  %s3111_s19 = smov %s3113_s21 }
 0x32a   :  { %14 = sbr.rel (!%p12_p6) target bundleno = 2 (0x2), region = 84 }

</bundles_post_ra>
